<compile_context>
chip_gen: v5e
topology: v5e:2x2
jax: 0.10.0
libtpu: 0.0.40
codegen_flags: <defaults>
</compile_context>

<pallas_src>
import functools
import math

import jax
import jax.numpy as jnp
from jax.experimental import pallas as pl
from jax.experimental.pallas import tpu as pltpu


def _pe_add_kernel(x_ref, pe_ref, o_ref):
    # pe (tS, 1, D) broadcasts over the batch (sublane) axis of x (tS, B, D).
    o_ref[...] = (x_ref[...] + pe_ref[...]).astype(o_ref.dtype)


def _pe_dropout_kernel(x_ref, pe_ref, u_ref, o_ref, *, p_drop: float):
    # Fold the 1/(1-p) scale into the add result once, then a single select.
    scale = jnp.asarray(1.0 / (1.0 - p_drop), dtype=x_ref.dtype)
    y = (x_ref[...] + pe_ref[...]) * scale
    keep = u_ref[...] >= jnp.float32(p_drop)        # P[keep] = 1 - p
    o_ref[...] = jnp.where(keep, y, jnp.zeros_like(y)).astype(o_ref.dtype)


def make_pe_table(d_model: int, max_len: int) -> jnp.ndarray:
    """Deterministic pe buffer, identical math to the PyTorch __init__."""
    position = jnp.arange(max_len, dtype=jnp.float32)[:, None]                  # (L, 1)
    div_term = jnp.exp(
        jnp.arange(0, d_model, 2, dtype=jnp.float32) * (-math.log(10000.0) / d_model)
    )                                                                           # (D/2,)
    pe = jnp.zeros((max_len, 1, d_model), dtype=jnp.float32)
    pe = pe.at[:, 0, 0::2].set(jnp.sin(position * div_term))
    pe = pe.at[:, 0, 1::2].set(jnp.cos(position * div_term))
    return pe


def _pick_seq_tile(S: int, B: int, D: int, itemsize: int) -> int:
    # Target ~2 MiB per x tile.  With x + rand + out double-buffered (plus the
    # tiny pe tile) the total stays < ~14 MiB: safe for v5e's 16 MiB scoped
    # default and leaves huge headroom on v6e (128 MiB) / v7x (64 MiB).
    target_bytes = 2 * 1024 * 1024
    per_row = max(B * D * max(itemsize, 4), 1)      # rand stream is f32
    tS = max(1, min(S, target_bytes // per_row))
    if tS >= 8:
        tS = (tS // 8) * 8                          # nicer, not required (S is a leading dim)
    return tS


def positional_encoding_forward(x, pe, *, p_drop: float = 0.1, key=None, training: bool = True):
    """x: (seq_len, batch, d_model) -> same shape/dtype."""
    S, B, D = x.shape
    assert 0.0 <= p_drop < 1.0, "dropout probability must be in [0, 1)"
    pe_slice = pe[:S].astype(x.dtype)               # (S, 1, D), cast once in the wrapper

    tS = _pick_seq_tile(S, B, D, jnp.dtype(x.dtype).itemsize)
    grid = (pl.cdiv(S, tS),)
    x_spec = pl.BlockSpec((tS, B, D), lambda i: (i, 0, 0))
    pe_spec = pl.BlockSpec((tS, 1, D), lambda i: (i, 0, 0))

    compiler_params = pltpu.CompilerParams(
        dimension_semantics=("parallel",),          # shard S-tiles across v7x's 2 TCs
        vmem_limit_bytes=48 * 1024 * 1024,          # headroom; still < v7x 64 MiB physical
    )

    apply_dropout = training and p_drop > 0.0
    if apply_dropout:
        if key is None:
            key = jax.random.PRNGKey(0)
        u = jax.random.uniform(key, (S, B, D), dtype=jnp.float32)
        return pl.pallas_call(
            functools.partial(_pe_dropout_kernel, p_drop=float(p_drop)),
            out_shape=jax.ShapeDtypeStruct((S, B, D), x.dtype),
            grid=grid,
            in_specs=[x_spec, pe_spec, x_spec],     # u tiles exactly like x
            out_specs=x_spec,
            compiler_params=compiler_params,
        )(x, pe_slice, u)

    return pl.pallas_call(
        _pe_add_kernel,
        out_shape=jax.ShapeDtypeStruct((S, B, D), x.dtype),
        grid=grid,
        in_specs=[x_spec, pe_spec],
        out_specs=x_spec,
        compiler_params=compiler_params,
    )(x, pe_slice)


if __name__ == "__main__":
    d_model = 32
    max_len = 64
    seq_len = 8
    batch = 2
    p_drop = 0.1

    pe = make_pe_table(d_model, max_len)

    root = jax.random.PRNGKey(0)
    kx, kdrop = jax.random.split(root)
    x = jax.random.normal(kx, (seq_len, batch, d_model), dtype=jnp.float32)

    # Training path (dropout applied).
    out = positional_encoding_forward(x, pe, p_drop=p_drop, key=kdrop, training=True)
    out = jax.block_until_ready(out)
    assert out.shape == x.shape and out.dtype == x.dtype

    # Reference uses the identical uniform draw (same key).
    u = jax.random.uniform(kdrop, x.shape, dtype=jnp.float32)
    ref = jnp.where(u >= p_drop, (x + pe[:seq_len]) * (1.0 / (1.0 - p_drop)), 0.0)
    assert jnp.allclose(out, ref, rtol=1e-5, atol=1e-5), "dropout-path mismatch"

    # Eval path (dropout is identity) -> pure positional-encoding add.
    out_eval = positional_encoding_forward(x, pe, p_drop=p_drop, training=False)
    out_eval = jax.block_until_ready(out_eval)
    assert jnp.allclose(out_eval, x + pe[:seq_len], rtol=1e-5, atol=1e-5), "eval-path mismatch"

    print("KERNEL_OK")
</pallas_src>

<mosaic_0001>
module attributes {stable_mosaic.version = 11 : i64} {
  func.func @_pe_dropout_kernel(%arg0: i32, %arg1: memref<8x2x32xf32, #tpu.memory_space<vmem>>, %arg2: memref<8x1x32xf32, #tpu.memory_space<vmem>>, %arg3: memref<8x2x32xf32, #tpu.memory_space<vmem>>, %arg4: memref<8x2x32xf32, #tpu.memory_space<vmem>>) attributes {dimension_semantics = [#tpu.dimension_semantics<parallel>], iteration_bounds = array<i64: 1>, scalar_prefetch = 0 : i64, scratch_operands = 0 : i64, tpu.core_type = #tpu.core_type<tc>, window_params = [{transform_indices = @transform_0, window_bounds = array<i64: 8, 2, 32>}, {transform_indices = @transform_1, window_bounds = array<i64: 8, 1, 32>}, {transform_indices = @transform_2, window_bounds = array<i64: 8, 2, 32>}, {transform_indices = @transform_3, window_bounds = array<i64: 8, 2, 32>}]} {
    %c0 = arith.constant 0 : index
    %c0_0 = arith.constant 0 : index
    %c0_1 = arith.constant 0 : index
    %0 = vector.load %arg1[%c0, %c0_0, %c0_1] : memref<8x2x32xf32, #tpu.memory_space<vmem>>, vector<8x2x32xf32>
    %c0_2 = arith.constant 0 : index
    %c0_3 = arith.constant 0 : index
    %c0_4 = arith.constant 0 : index
    %1 = vector.load %arg2[%c0_2, %c0_3, %c0_4] : memref<8x1x32xf32, #tpu.memory_space<vmem>>, vector<8x1x32xf32>
    %2 = vector.broadcast %1 : vector<8x1x32xf32> to vector<8x2x32xf32>
    %3 = arith.addf %0, %2 : vector<8x2x32xf32>
    %cst = arith.constant 1.11111116 : f32
    %4 = vector.broadcast %cst : f32 to vector<8x2x32xf32>
    %5 = arith.mulf %3, %4 : vector<8x2x32xf32>
    %c0_5 = arith.constant 0 : index
    %c0_6 = arith.constant 0 : index
    %c0_7 = arith.constant 0 : index
    %6 = vector.load %arg3[%c0_5, %c0_6, %c0_7] : memref<8x2x32xf32, #tpu.memory_space<vmem>>, vector<8x2x32xf32>
    %cst_8 = arith.constant 1.000000e-01 : f32
    %7 = vector.broadcast %cst_8 : f32 to vector<8x2x32xf32>
    %8 = arith.cmpf oge, %6, %7 : vector<8x2x32xf32>
    %cst_9 = arith.constant 0.000000e+00 : f32
    %9 = vector.broadcast %cst_9 : f32 to vector<8x2x32xf32>
    %10 = arith.select %8, %5, %9 : vector<8x2x32xi1>, vector<8x2x32xf32>
    %c0_10 = arith.constant 0 : index
    %c0_11 = arith.constant 0 : index
    %c0_12 = arith.constant 0 : index
    %11 = vector.load %arg4[%c0_10, %c0_11, %c0_12] : memref<8x2x32xf32, #tpu.memory_space<vmem>>, vector<8x2x32xf32>
    tpu.vector_store %arg4[%c0_10, %c0_11, %c0_12], %10 {strides = array<i32>} : memref<8x2x32xf32, #tpu.memory_space<vmem>>, vector<8x2x32xf32>,
    return
  }
  func.func @transform_0(%arg0: i32) -> (i32, i32, i32) {
    %c0_i32 = arith.constant 0 : i32
    %c0_i32_0 = arith.constant 0 : i32
    %c0_i32_1 = arith.constant 0 : i32
    return %arg0, %c0_i32, %c0_i32_0 : i32, i32, i32
  }
  func.func @transform_1(%arg0: i32) -> (i32, i32, i32) {
    %c0_i32 = arith.constant 0 : i32
    %c0_i32_0 = arith.constant 0 : i32
    %c0_i32_1 = arith.constant 0 : i32
    return %arg0, %c0_i32, %c0_i32_0 : i32, i32, i32
  }
  func.func @transform_2(%arg0: i32) -> (i32, i32, i32) {
    %c0_i32 = arith.constant 0 : i32
    %c0_i32_0 = arith.constant 0 : i32
    %c0_i32_1 = arith.constant 0 : i32
    return %arg0, %c0_i32, %c0_i32_0 : i32, i32, i32
  }
  func.func @transform_3(%arg0: i32) -> (i32, i32, i32) {
    %c0_i32 = arith.constant 0 : i32
    %c0_i32_0 = arith.constant 0 : i32
    %c0_i32_1 = arith.constant 0 : i32
    return %arg0, %c0_i32, %c0_i32_0 : i32, i32, i32
  }
}

</mosaic_0001>

<bundles_post_ra>
// kernel: tpu_custom_call.1
= control target key start
LH: loop header
LB: loop body
LE: loop exit
PB: predicated region body
PF: predicated region fallthrough
CT: control target
= control target key end

     0   :  { %8 = vsyncpa [#allocation3], 0  ;;  %s346_s0 = inlined_call_operand.hbm [shape: f32[8,2,32], index: 0, kind: input, shape index: {}]   ;;  %s347_s1 = inlined_call_operand.hbm [shape: f32[8,1,32], index: 1, kind: input, shape index: {}]   ;;  %s348_s2 = inlined_call_operand.hbm [shape: f32[8,2,32], index: 2, kind: input, shape index: {}]   ;;  %s349_s3 = inlined_call_operand.hbm [shape: f32[8,2,32], index: 3, kind: output, shape index: {}]  }
   0x1   :  { %9 = vsyncpa [#allocation6], 0  ;;  %s28_s14 = sshll.u32 %s347_s1, 4  ;;  %s29_s14 = int_to_ptr.hbm [resolvable:$true] %s28_s14 }
   0x2   :  { %10 = vsyncpa [#allocation4], 0  ;;  %s289_s15 = smov [#allocation5]   ;;  %s15_s19 = sshll.u32 %s346_s0, 4  ;;  %s16_s19 = int_to_ptr.hbm [resolvable:$true] %s15_s19 }
   0x3   :  { %s30_s16 = sshll.u32 %s289_s15, 4  ;;  %s290_s20 = smov 16   ;;  %s31_s16 = int_to_ptr.vmem [resolvable:$true] %s30_s16 }
   0x4   :  { %s291_s21 = smov 1   ;;  %s292_s22 = smov [#allocation2]  }
   0x5   :  { %36 = dma.hbm_to_vmem [thread:$0]  %s29_s14, 128, %s31_s16, [#allocation6], %s290_s20, %s290_s20, %s291_s21  }
   0x6   :  { %s17_s23 = sshll.u32 %s292_s22, 4  ;;  %s293_s24 = smov 32   ;;  %s18_s23 = int_to_ptr.vmem [resolvable:$true] %s17_s23 }
   0x7   :  { %s294_s25 = smov 2   ;;  %s41_s27 = sshll.u32 %s348_s2, 4  ;;  %s42_s27 = int_to_ptr.hbm [resolvable:$true] %s41_s27 }
   0x8   :  { %23 = dma.hbm_to_vmem [thread:$0]  %s16_s19, 256, %s18_s23, [#allocation3], %s293_s24, %s293_s24, %s294_s25  }
   0x9   :  { %s295_s28 = smov [#allocation7]  }
   0xa   :  { %s43_s0 = sshll.u32 %s295_s28, 4  ;;  %s44_s0 = int_to_ptr.vmem [resolvable:$true] %s43_s0 }
   0xb   :  { %49 = dma.hbm_to_vmem [thread:$0]  %s42_s27, 256, %s44_s0, [#allocation6], %s293_s24, %s293_s24, %s294_s25  }
   0xc   :  { %283 = dma.done.wait [#allocation3], 256  }
   0xd   :  { %284 = vsyncadd [#allocation3], 4294967040 }
   0xe   :  { %285 = dma.done.wait [#allocation6], 384  }
   0xf   :  { %286 = vsyncadd [#allocation6], 4294966912  ;;  %vm142_vm0 = vcmask 254976   ;;  %v62_v0 = vld [vmem:[#allocation2] sm:$0x3]  ;;  %s296_s2 = smov [#allocation8]  }
  0x10   :  { %v179_v1 = vld [vmem:[#allocation5] ss:$0 sm:$0xff]  ;;  %v118_v2 = vld [vmem:[#allocation7] sm:$0x3]  ;;  %v63_v3 = vld [vmem:[#allocation2 + $0x2] sm:$0x3] }
  0x11   :  { %v102_v4 = vadd.f32 %v179_v1, %v62_v0  ;;  %vm126_vm1 = vcmp.ge.f32.partialorder %v118_v2, 0.1  ;;  %v180_v5 = vld [vmem:[#allocation5 + $0x1] ss:$0 sm:$0xff]  ;;  %v119_v6 = vld [vmem:[#allocation7 + $0x2] sm:$0x3] }
  0x12   :  { %vm127_vm2 = vcmp.ge.f32.partialorder %v119_v6, 0.1  ;;  %v64_v7 = vld [vmem:[#allocation2 + $0x4] sm:$0x3]  ;;  %v103_v9 = vadd.f32 %v180_v5, %v63_v3  ;;  %v181_v10 = vld [vmem:[#allocation5 + $0x2] ss:$0 sm:$0xff] }
  0x13   :  { %v110_v8 = vmul.f32 1.1111112, %v102_v4  ;;  %v120_v11 = vld [vmem:[#allocation7 + $0x4] sm:$0x3]  ;;  %v65_v12 = vld [vmem:[#allocation2 + $0x6] sm:$0x3]  ;;  %v104_v15 = vadd.f32 %v181_v10, %v64_v7 }
  0x14   :  { %vm128_vm3 = vcmp.ge.f32.partialorder %v120_v11, 0.1  ;;  %v111_v14 = vmul.f32 1.1111112, %v103_v9  ;;  %v182_v16 = vld [vmem:[#allocation5 + $0x3] ss:$0 sm:$0xff] }
  0x15   :  { %v134_v13 = vsel %vm126_vm1, %v110_v8, 0.0  ;;  %v121_v17 = vld [vmem:[#allocation7 + $0x6] sm:$0x3]  ;;  %v66_v18 = vld [vmem:[#allocation2 + $0x8] sm:$0x3]  ;;  %v105_v21 = vadd.f32 %v182_v16, %v65_v12  ;;  %s155_s29 = sshll.u32 %s296_s2, 4  ;;  %s156_s29 = int_to_ptr.vmem [resolvable:$true] %s155_s29 }
  0x16   :  { %143 = vst.msk [vmem:[#allocation8] sm:$0x3] %vm142_vm0, %v134_v13  ;;  %v135_v19 = vsel %vm127_vm2, %v111_v14, 0.0  ;;  %v112_v20 = vmul.f32 1.1111112, %v104_v15  ;;  %s157_s5 = sshll.u32 %s349_s3, 4  ;;  %s158_s5 = int_to_ptr.hbm [resolvable:$true] %s157_s5 }
  0x17   :  { %vm129_vm4 = vcmp.ge.f32.partialorder %v121_v17, 0.1  ;;  %144 = vst.msk [vmem:[#allocation8 + $0x2] sm:$0x3] %vm142_vm0, %v135_v19  ;;  %v183_v22 = vld [vmem:[#allocation5 + $0x4] ss:$0 sm:$0xff] }
  0x18   :  { %v136_v23 = vsel %vm128_vm3, %v112_v20, 0.0  ;;  %v113_v24 = vmul.f32 1.1111112, %v105_v21  ;;  %v122_v25 = vld [vmem:[#allocation7 + $0x8] sm:$0x3]  ;;  %v106_v26 = vadd.f32 %v183_v22, %v66_v18 }
  0x19   :  { %145 = vst.msk [vmem:[#allocation8 + $0x4] sm:$0x3] %vm142_vm0, %v136_v23  ;;  %vm130_vm5 = vcmp.ge.f32.partialorder %v122_v25, 0.1  ;;  %v67_v27 = vld [vmem:[#allocation2 + $0xa] sm:$0x3] }
  0x1a   :  { %v137_v28 = vsel %vm129_vm4, %v113_v24, 0.0  ;;  %v184_v29 = vld [vmem:[#allocation5 + $0x5] ss:$0 sm:$0xff]  ;;  %v114_v30 = vmul.f32 1.1111112, %v106_v26 }
  0x1b   :  { %146 = vst.msk [vmem:[#allocation8 + $0x6] sm:$0x3] %vm142_vm0, %v137_v28  ;;  %v123_v31 = vld [vmem:[#allocation7 + $0xa] sm:$0x3]  ;;  %v107_v32 = vadd.f32 %v184_v29, %v67_v27  ;;  %v68_v33 = vld [vmem:[#allocation2 + $0xc] sm:$0x3] }
  0x1c   :  { %vm131_vm6 = vcmp.ge.f32.partialorder %v123_v31, 0.1  ;;  %v138_v34 = vsel %vm130_vm5, %v114_v30, 0.0  ;;  %v185_v35 = vld [vmem:[#allocation5 + $0x6] ss:$0 sm:$0xff] }
  0x1d   :  { %v124_v36 = vld [vmem:[#allocation7 + $0xc] sm:$0x3]  ;;  %147 = vst.msk [vmem:[#allocation8 + $0x8] sm:$0x3] %vm142_vm0, %v138_v34  ;;  %v115_v37 = vmul.f32 1.1111112, %v107_v32  ;;  %v108_v38 = vadd.f32 %v185_v35, %v68_v33 }
  0x1e   :  { %v69_v39 = vld [vmem:[#allocation2 + $0xe] sm:$0x3]  ;;  %v186_v40 = vld [vmem:[#allocation5 + $0x7] ss:$0 sm:$0xff]  ;;  %vm132_vm7 = vcmp.ge.f32.partialorder %v124_v36, 0.1 }
  0x1f   :  { %v139_v41 = vsel %vm131_vm6, %v115_v37, 0.0  ;;  %v125_v42 = vld [vmem:[#allocation7 + $0xe] sm:$0x3]  ;;  %v116_v43 = vmul.f32 1.1111112, %v108_v38  ;;  %v109_v44 = vadd.f32 %v186_v40, %v69_v39 }
  0x20   :  { %148 = vst.msk [vmem:[#allocation8 + $0xa] sm:$0x3] %vm142_vm0, %v139_v41  ;;  %vm133_vm8 = vcmp.ge.f32.partialorder %v125_v42, 0.1 }
  0x21   :  { %v140_v45 = vsel %vm132_vm7, %v116_v43, 0.0  ;;  %v117_v46 = vmul.f32 1.1111112, %v109_v44 }
  0x22   :  { %149 = vst.msk [vmem:[#allocation8 + $0xc] sm:$0x3] %vm142_vm0, %v140_v45 }
  0x23   :  { %v141_v47 = vsel %vm133_vm8, %v117_v46, 0.0 }
  0x24   :  { %150 = vst.msk [vmem:[#allocation8 + $0xe] sm:$0x3] %vm142_vm0, %v141_v47 }
  0x25   :  { %163 = dma.vmem_to_hbm [thread:$0]  %s156_s29, 256, %s158_s5, [#allocation4], %s293_s24, %s293_s24, %s294_s25  }
  0x26   :  { %287 = dma.done.wait [#allocation4], 256  }
  0x27   :  { %288 = vsyncadd [#allocation4], 4294967040 }
  0x28   :  { %168 = vsyncpa [#allocation3], 1 }
  0x29   :  { %169 = vsyncpa [#allocation6], 1 }
  0x2a   :  { %170 = vsyncpa [#allocation4], 1 }

</bundles_post_ra>
